<compile_context>
chip_gen: v6e
topology: v6e:2x2x1
jax: 0.10.0
libtpu: 0.0.40
codegen_flags: <defaults>
</compile_context>

<pallas_src>
import jax
import jax.numpy as jnp
from jax.experimental import pallas as pl
from jax.experimental.pallas import tpu as pltpu


def _round_up(x, m):
    return ((x + m - 1) // m) * m


def _gcn_agg_linear_kernel(a_ref, x_ref, w_ref, b_ref, o_ref, acc_ref):
    """acc += A_tile @ X_tile over the K grid axis; finalize: (acc @ W) + b."""
    k = pl.program_id(1)

    @pl.when(k == 0)
    def _init():
        acc_ref[...] = jnp.zeros_like(acc_ref)

    acc_ref[...] += jnp.dot(a_ref[...], x_ref[...], preferred_element_type=jnp.float32)

    @pl.when(k == pl.num_programs(1) - 1)
    def _finalize():
        out = jnp.dot(acc_ref[...], w_ref[...], preferred_element_type=jnp.float32)
        o_ref[...] = (out + b_ref[...]).astype(o_ref.dtype)


def _gcn_agg_bias_kernel(a_ref, f_ref, b_ref, o_ref, acc_ref):
    """Linear already folded into the features: acc += A_tile @ (XW)_tile; finalize: acc + b."""
    k = pl.program_id(1)

    @pl.when(k == 0)
    def _init():
        acc_ref[...] = jnp.zeros_like(acc_ref)

    acc_ref[...] += jnp.dot(a_ref[...], f_ref[...], preferred_element_type=jnp.float32)

    @pl.when(k == pl.num_programs(1) - 1)
    def _finalize():
        o_ref[...] = (acc_ref[...] + b_ref[...]).astype(o_ref.dtype)


def gcn_layer(adj, x, w_pt, b_pt, *, tile_n=256, tile_k=512, agg_dtype=jnp.bfloat16):
    """GCNLayer forward.

    adj : [N, N]    dense adjacency, adj[v, u] = 1 iff edge u -> v (0/1 values)
    x   : [N, in_feats]
    w_pt: [out_feats, in_feats]   (PyTorch nn.Linear weight layout)
    b_pt: [out_feats]
    returns [N, out_feats] float32
    """
    n, in_feats = x.shape
    out_feats = w_pt.shape[0]

    # Lane-pad feature dims to multiples of 128 (dense vst, full MXU lane use).
    in_pad = _round_up(in_feats, 128)
    out_pad = _round_up(out_feats, 128)

    # Clamp tiles for small graphs while keeping (8,128)-legal blocks, then pad N.
    tile_n = min(tile_n, _round_up(n, 128))
    tile_k = min(tile_k, _round_up(n, 128))
    n_row_pad = _round_up(n, tile_n)
    n_col_pad = _round_up(n, tile_k)

    # Adjacency is 0/1 -> exact in bf16; padding rows/cols are zero (no contribution).
    adj_p = jnp.zeros((n_row_pad, n_col_pad), agg_dtype).at[:n, :n].set(adj.astype(agg_dtype))

    w = w_pt.T.astype(jnp.float32)  # [in_feats, out_feats]
    b_p = jnp.zeros((1, out_pad), jnp.float32).at[0, :out_feats].set(b_pt.astype(jnp.float32))

    grid = (n_row_pad // tile_n, n_col_pad // tile_k)
    cparams = pltpu.CompilerParams(dimension_semantics=("parallel", "arbitrary"))

    # Run the big N x N contraction against the narrower feature width.
    pre_linear = out_pad < in_pad

    if pre_linear:
        # Apply the linear first (cheap O(N*in*out) XLA matmul), aggregate A @ (XW).
        xw = x.astype(jnp.float32) @ w  # [n, out_feats]
        f_p = jnp.zeros((n_col_pad, out_pad), agg_dtype).at[:n, :out_feats].set(
            xw.astype(agg_dtype))
        out_p = pl.pallas_call(
            _gcn_agg_bias_kernel,
            out_shape=jax.ShapeDtypeStruct((n_row_pad, out_pad), jnp.float32),
            grid_spec=pltpu.PrefetchScalarGridSpec(
                num_scalar_prefetch=0,
                grid=grid,
                in_specs=[
                    pl.BlockSpec((tile_n, tile_k), lambda i, k: (i, k)),   # A tile
                    pl.BlockSpec((tile_k, out_pad), lambda i, k: (k, 0)),  # (XW) K-slab
                    pl.BlockSpec((1, out_pad), lambda i, k: (0, 0)),       # bias
                ],
                out_specs=pl.BlockSpec((tile_n, out_pad), lambda i, k: (i, 0)),
                scratch_shapes=[pltpu.VMEM((tile_n, out_pad), jnp.float32)],
            ),
            compiler_params=cparams,
        )(adj_p, f_p, b_p)
    else:
        x_p = jnp.zeros((n_col_pad, in_pad), agg_dtype).at[:n, :in_feats].set(
            x.astype(agg_dtype))
        w_p = jnp.zeros((in_pad, out_pad), jnp.float32).at[:in_feats, :out_feats].set(w)
        out_p = pl.pallas_call(
            _gcn_agg_linear_kernel,
            out_shape=jax.ShapeDtypeStruct((n_row_pad, out_pad), jnp.float32),
            grid_spec=pltpu.PrefetchScalarGridSpec(
                num_scalar_prefetch=0,
                grid=grid,
                in_specs=[
                    pl.BlockSpec((tile_n, tile_k), lambda i, k: (i, k)),   # A tile
                    pl.BlockSpec((tile_k, in_pad), lambda i, k: (k, 0)),   # X K-slab
                    pl.BlockSpec((in_pad, out_pad), lambda i, k: (0, 0)),  # W (resident)
                    pl.BlockSpec((1, out_pad), lambda i, k: (0, 0)),       # bias
                ],
                out_specs=pl.BlockSpec((tile_n, out_pad), lambda i, k: (i, 0)),
                scratch_shapes=[pltpu.VMEM((tile_n, in_pad), jnp.float32)],
            ),
            compiler_params=cparams,
        )(adj_p, x_p, w_p, b_p)

    return out_p[:n, :out_feats]


if __name__ == "__main__":
    # Small synthetic graph / features, deterministic.
    N = 64
    IN_FEATS = 16
    OUT_FEATS = 32

    key = jax.random.PRNGKey(0)
    k_adj, k_x, k_w, k_b = jax.random.split(key, 4)

    # Dense binary adjacency (A[v, u] = 1 iff edge u -> v).
    adj = jax.random.bernoulli(k_adj, p=0.2, shape=(N, N)).astype(jnp.float32)
    x = jax.random.normal(k_x, (N, IN_FEATS), dtype=jnp.float32)

    # nn.Linear(in_feats, out_feats): weight [out, in], bias [out].
    bound = 1.0 / jnp.sqrt(jnp.float32(IN_FEATS))
    w_pt = jax.random.uniform(k_w, (OUT_FEATS, IN_FEATS), jnp.float32, -bound, bound)
    b_pt = jax.random.uniform(k_b, (OUT_FEATS,), jnp.float32, -bound, bound)

    # --- Path 1: in_feats <= out_feats -> aggregate X, apply linear in finalize. ---
    out = gcn_layer(adj, x, w_pt, b_pt)
    out = jax.block_until_ready(out)
    assert out.shape == (N, OUT_FEATS)

    # Reference with the same bf16 cast of X (adjacency is exact in bf16), f32 math.
    x_bf = x.astype(jnp.bfloat16).astype(jnp.float32)
    ref = (adj @ x_bf) @ w_pt.T + b_pt
    assert jnp.allclose(out, ref, atol=1e-2, rtol=1e-2), float(jnp.max(jnp.abs(out - ref)))

    # --- Path 2: in_feats > out_feats -> linear folded into features before aggregation. ---
    IN2, OUT2 = 256, 32
    k_x2, k_w2, k_b2 = jax.random.split(jax.random.PRNGKey(1), 3)
    x2 = jax.random.normal(k_x2, (N, IN2), dtype=jnp.float32)
    bound2 = 1.0 / jnp.sqrt(jnp.float32(IN2))
    w2 = jax.random.uniform(k_w2, (OUT2, IN2), jnp.float32, -bound2, bound2)
    b2 = jax.random.uniform(k_b2, (OUT2,), jnp.float32, -bound2, bound2)

    out2 = jax.block_until_ready(gcn_layer(adj, x2, w2, b2))
    xw_bf = (x2 @ w2.T).astype(jnp.bfloat16).astype(jnp.float32)
    ref2 = adj @ xw_bf + b2
    assert out2.shape == (N, OUT2)
    assert jnp.allclose(out2, ref2, atol=1e-2, rtol=1e-2), float(jnp.max(jnp.abs(out2 - ref2)))

    print("KERNEL_OK")
</pallas_src>

<mosaic_0001>
module attributes {stable_mosaic.version = 11 : i64} {
  func.func @_gcn_agg_linear_kernel(%arg0: i32, %arg1: i32, %arg2: memref<128x128xbf16, #tpu.memory_space<vmem>>, %arg3: memref<128x128xbf16, #tpu.memory_space<vmem>>, %arg4: memref<128x128xf32, #tpu.memory_space<vmem>>, %arg5: memref<1x128xf32, #tpu.memory_space<vmem>>, %arg6: memref<128x128xf32, #tpu.memory_space<vmem>>, %arg7: memref<128x128xf32, #tpu.memory_space<vmem>>) attributes {dimension_semantics = [#tpu.dimension_semantics<parallel>, #tpu.dimension_semantics<arbitrary>], iteration_bounds = array<i64: 1, 1>, scalar_prefetch = 0 : i64, scratch_operands = 1 : i64, tpu.core_type = #tpu.core_type<tc>, window_params = [{transform_indices = @transform_0, window_bounds = array<i64: 128, 128>}, {transform_indices = @transform_1, window_bounds = array<i64: 128, 128>}, {pipeline_mode = #tpu.pipeline_mode<synchronous>, transform_indices = @transform_2, window_bounds = array<i64: 128, 128>}, {pipeline_mode = #tpu.pipeline_mode<synchronous>, transform_indices = @transform_3, window_bounds = array<i64: 1, 128>}, {transform_indices = @transform_4, window_bounds = array<i64: 128, 128>}]} {
    %c0_i32 = arith.constant 0 : i32
    %0 = arith.cmpi eq, %arg1, %c0_i32 : i32
    %1 = arith.extui %0 : i1 to i32
    %c0_i32_0 = arith.constant 0 : i32
    %2 = arith.cmpi ne, %1, %c0_i32_0 : i32
    scf.if %2 {
      %cst_10 = arith.constant 0.000000e+00 : f32
      %12 = vector.broadcast %cst_10 : f32 to vector<128x128xf32>
      %c0_11 = arith.constant 0 : index
      %c0_12 = arith.constant 0 : index
      %13 = vector.load %arg7[%c0_11, %c0_12] : memref<128x128xf32, #tpu.memory_space<vmem>>, vector<128x128xf32>
      tpu.vector_store %arg7[%c0_11, %c0_12], %12 {strides = array<i32>} : memref<128x128xf32, #tpu.memory_space<vmem>>, vector<128x128xf32>,
    } else {
    }
    %c0 = arith.constant 0 : index
    %c0_1 = arith.constant 0 : index
    %3 = vector.load %arg7[%c0, %c0_1] : memref<128x128xf32, #tpu.memory_space<vmem>>, vector<128x128xf32>
    %c0_2 = arith.constant 0 : index
    %c0_3 = arith.constant 0 : index
    %4 = vector.load %arg2[%c0_2, %c0_3] : memref<128x128xbf16, #tpu.memory_space<vmem>>, vector<128x128xbf16>
    %c0_4 = arith.constant 0 : index
    %c0_5 = arith.constant 0 : index
    %5 = vector.load %arg3[%c0_4, %c0_5] : memref<128x128xbf16, #tpu.memory_space<vmem>>, vector<128x128xbf16>
    %cst = arith.constant dense<0.000000e+00> : vector<128x128xf32>
    %6 = tpu.matmul %4, %5, %cst {dimension_numbers = #tpu.dot_dimension_numbers<[1], [0], [0], [1], [0, 0, 1, 1], [], []>} : vector<128x128xbf16>, vector<128x128xbf16>, vector<128x128xf32> -> vector<128x128xf32>
    %7 = arith.addf %3, %6 : vector<128x128xf32>
    %c0_6 = arith.constant 0 : index
    %c0_7 = arith.constant 0 : index
    %8 = vector.load %arg7[%c0_6, %c0_7] : memref<128x128xf32, #tpu.memory_space<vmem>>, vector<128x128xf32>
    tpu.vector_store %arg7[%c0_6, %c0_7], %7 {strides = array<i32>} : memref<128x128xf32, #tpu.memory_space<vmem>>, vector<128x128xf32>,
    %c0_i32_8 = arith.constant 0 : i32
    %9 = arith.cmpi eq, %arg1, %c0_i32_8 : i32
    %10 = arith.extui %9 : i1 to i32
    %c0_i32_9 = arith.constant 0 : i32
    %11 = arith.cmpi ne, %10, %c0_i32_9 : i32
    scf.if %11 {
      %c0_10 = arith.constant 0 : index
      %c0_11 = arith.constant 0 : index
      %12 = vector.load %arg7[%c0_10, %c0_11] : memref<128x128xf32, #tpu.memory_space<vmem>>, vector<128x128xf32>
      %c0_12 = arith.constant 0 : index
      %c0_13 = arith.constant 0 : index
      %13 = vector.load %arg4[%c0_12, %c0_13] : memref<128x128xf32, #tpu.memory_space<vmem>>, vector<128x128xf32>
      %cst_14 = arith.constant dense<0.000000e+00> : vector<128x128xf32>
      %14 = tpu.matmul %12, %13, %cst_14 {dimension_numbers = #tpu.dot_dimension_numbers<[1], [0], [0], [1], [0, 0, 1, 1], [], []>} : vector<128x128xf32>, vector<128x128xf32>, vector<128x128xf32> -> vector<128x128xf32>
      %c0_15 = arith.constant 0 : index
      %c0_16 = arith.constant 0 : index
      %15 = vector.load %arg5[%c0_15, %c0_16] : memref<1x128xf32, #tpu.memory_space<vmem>>, vector<1x128xf32>
      %16 = vector.broadcast %15 : vector<1x128xf32> to vector<128x128xf32>
      %17 = arith.addf %14, %16 : vector<128x128xf32>
      %c0_17 = arith.constant 0 : index
      %c0_18 = arith.constant 0 : index
      %18 = vector.load %arg6[%c0_17, %c0_18] : memref<128x128xf32, #tpu.memory_space<vmem>>, vector<128x128xf32>
      tpu.vector_store %arg6[%c0_17, %c0_18], %17 {strides = array<i32>} : memref<128x128xf32, #tpu.memory_space<vmem>>, vector<128x128xf32>,
    } else {
    }
    return
  }
  func.func @transform_0(%arg0: i32, %arg1: i32) -> (i32, i32) {
    %c0_i32 = arith.constant 0 : i32
    return %arg0, %arg1 : i32, i32
  }
  func.func @transform_1(%arg0: i32, %arg1: i32) -> (i32, i32) {
    %c0_i32 = arith.constant 0 : i32
    %c0_i32_0 = arith.constant 0 : i32
    return %arg1, %c0_i32 : i32, i32
  }
  func.func @transform_2(%arg0: i32, %arg1: i32) -> (i32, i32) {
    %c0_i32 = arith.constant 0 : i32
    %c0_i32_0 = arith.constant 0 : i32
    %c0_i32_1 = arith.constant 0 : i32
    return %c0_i32, %c0_i32_0 : i32, i32
  }
  func.func @transform_3(%arg0: i32, %arg1: i32) -> (i32, i32) {
    %c0_i32 = arith.constant 0 : i32
    %c0_i32_0 = arith.constant 0 : i32
    %c0_i32_1 = arith.constant 0 : i32
    return %c0_i32, %c0_i32_0 : i32, i32
  }
  func.func @transform_4(%arg0: i32, %arg1: i32) -> (i32, i32) {
    %c0_i32 = arith.constant 0 : i32
    %c0_i32_0 = arith.constant 0 : i32
    return %arg0, %c0_i32 : i32, i32
  }
}

</mosaic_0001>

<bundles_post_ra>
// kernel: tpu_custom_call.1
= control target key start
LH: loop header
LB: loop body
LE: loop exit
PB: predicated region body
PF: predicated region fallthrough
CT: control target
= control target key end

     0   :  { %9 = vsyncpa [#allocation4], 0  ;;  %s891_s0 = inlined_call_operand.hbm [shape: bf16[128,128], index: 0, kind: input, shape index: {}]   ;;  %s892_s1 = inlined_call_operand.hbm [shape: bf16[128,128], index: 1, kind: input, shape index: {}]   ;;  %s893_s2 = inlined_call_operand.hbm [shape: f32[128,128], index: 2, kind: input, shape index: {}]   ;;  %s894_s3 = inlined_call_operand.vmem [shape: f32[1,128], index: 3, kind: input, shape index: {}]   ;;  %s895_s4 = inlined_call_operand.hbm [shape: f32[128,128], index: 4, kind: output, shape index: {}]  }
   0x1   :  { %10 = vsyncpa [#allocation7], 0 }
   0x2   :  { %11 = vsyncpa [#allocation5], 0  ;;  %s837_s15 = smov [#allocation6]   ;;  %s838_s17 = smov [#allocation3]  }
   0x3   :  { %s29_s16 = sshll.u32 %s837_s15, 4  ;;  %s17_s18 = sshll.u32 %s838_s17, 4  ;;  %s30_s16 = int_to_ptr.vmem [resolvable:$true] %s29_s16  ;;  %s18_s18 = int_to_ptr.vmem [resolvable:$true] %s17_s18 }
   0x4   :  { %s759_s19 = scalar_lea.vmem %s30_s16, 1024  ;;  %p764_p1 = scmp.lt.s32.totalorder %s30_s16, %s30_s16 }
   0x5   :  { %p760_p0 = scmp.ne.s32.totalorder %s30_s16, %s759_s19  ;;  %p765_p2 = scmp.lt.s32.totalorder %s759_s19, %s759_s19 }
   0x7   :  { %p766_p3 = por %p765_p2, %p764_p1 }
   0x9   :  { %p767_p4 = pnand %p766_p3, %p760_p0 }
   0xb   :  { %770 = shalt.err (!%p767_p4)
}
   0xc   :  { %s839_s20 = smov 64   ;;  %s840_s21 = smov 4  }
   0xd   :  { %35 = dma.hbm_to_vmem [thread:$0]  %s892_s1, 1024, %s30_s16, [#allocation7], %s839_s20, %s839_s20, %s840_s21  }
   0xe   :  { %s779_s24 = scalar_lea.vmem %s18_s18, 1024  ;;  %p784_p6 = scmp.lt.s32.totalorder %s18_s18, %s18_s18 }
   0xf   :  { %p780_p5 = scmp.ne.s32.totalorder %s18_s18, %s779_s24  ;;  %p785_p7 = scmp.lt.s32.totalorder %s779_s24, %s779_s24 }
  0x11   :  { %p786_p8 = por %p785_p7, %p784_p6 }
  0x13   :  { %p787_p9 = pnand %p786_p8, %p780_p5 }
  0x15   :  { %790 = shalt.err (!%p787_p9)
}
  0x16   :  { %23 = dma.hbm_to_vmem [thread:$0]  %s891_s0, 1024, %s18_s18, [#allocation4], %s839_s20, %s839_s20, %s840_s21  }
  0x17   :  { %s841_s27 = smov [#allocation8]  }
  0x18   :  { %s41_s28 = sshll.u32 %s841_s27, 4  ;;  %s42_s28 = int_to_ptr.vmem [resolvable:$true] %s41_s28 }
  0x19   :  { %s799_s29 = scalar_lea.vmem %s42_s28, 2048  ;;  %p804_p11 = scmp.lt.s32.totalorder %s42_s28, %s42_s28 }
  0x1a   :  { %p800_p10 = scmp.ne.s32.totalorder %s42_s28, %s799_s29  ;;  %p805_p12 = scmp.lt.s32.totalorder %s799_s29, %s799_s29 }
  0x1c   :  { %p806_p13 = por %p805_p12, %p804_p11 }
  0x1e   :  { %p807_p0 = pnand %p806_p13, %p800_p10 }
  0x20   :  { %810 = shalt.err (!%p807_p0)
}
  0x21   :  { %s842_s1 = smov 128   ;;  %s843_s30 = smov 8  }
  0x22   :  { %47 = dma.hbm_to_vmem [thread:$0]  %s893_s2, 2048, %s42_s28, [#allocation7], %s842_s1, %s842_s1, %s843_s30  }
  0x23   :  { %831 = dma.done.wait [#allocation4], 1024  }
  0x24   :  { %832 = vsyncadd [#allocation4], 4294966272 }
  0x25   :  { %833 = dma.done.wait [#allocation7], 3072  }
  0x26   :  { %834 = vsyncadd [#allocation7], 4294964224  ;;  %v735_v0 = vld [vmem:[#allocation6 + $0x38] sm:$0xff]   ;;  %v736_v1 = vld [vmem:[#allocation6 + $0x30] sm:$0xff]  }
  0x27   :  { %639 = vmatprep.subr.bf16.mxu0 %v735_v0  ;;  %v737_v2 = vld [vmem:[#allocation6 + $0x28] sm:$0xff]   ;;  %v738_v3 = vld [vmem:[#allocation6 + $0x20] sm:$0xff]   ;;  %v739_v5 = vld [vmem:[#allocation6 + $0x18] sm:$0xff]  }
  0x28   :  { %640 = vmatpush3.bf16.msra.mxu0 %v735_v0  ;;  %v743_v4 = vld [vmem:[#allocation3] sm:$0xff]   ;;  %v740_v6 = vld [vmem:[#allocation6 + $0x10] sm:$0xff]   ;;  %v387_v7 = vld [vmem:[#allocation8 + $0x78] sm:$0xff] }
  0x29   :  { %641 = vmatprep.subr.bf16.mxu0 %v736_v1  ;;  %655 = vmatprep.mubr.bf16.mxu0 %v743_v4  ;;  %v386_v8 = vld [vmem:[#allocation8 + $0x70] sm:$0xff]  ;;  %v385_v9 = vld [vmem:[#allocation8 + $0x68] sm:$0xff]  ;;  %v384_v11 = vld [vmem:[#allocation8 + $0x60] sm:$0xff] }
  0x2a   :  { %671 = vmatprep.subr.mxu1 %v387_v7  ;;  %v741_v10 = vld [vmem:[#allocation6 + $0x8] sm:$0xff]   ;;  %v383_v12 = vld [vmem:[#allocation8 + $0x58] sm:$0xff]  ;;  %v742_v13 = vld [vmem:[#allocation6] sm:$0xff]  }
  0x2b   :  { %672 = vmatpush3.msra.mxu1 %v387_v7  ;;  %v382_v14 = vld [vmem:[#allocation8 + $0x50] sm:$0xff]  ;;  %v381_v15 = vld [vmem:[#allocation8 + $0x48] sm:$0xff]  ;;  %v380_v16 = vld [vmem:[#allocation8 + $0x40] sm:$0xff] }
  0x2c   :  { %642 = vmatpush3.bf16.msra.mxu0 %v736_v1  ;;  %673 = vmatprep.subr.mxu1 %v386_v8  ;;  %v744_v17 = vld [vmem:[#allocation3 + $0x8] sm:$0xff]   ;;  %v379_v18 = vld [vmem:[#allocation8 + $0x38] sm:$0xff]  ;;  %v745_v19 = vld [vmem:[#allocation3 + $0x10] sm:$0xff]  }
  0x2d   :  { %643 = vmatprep.subr.bf16.mxu0 %v737_v2  ;;  %674 = vmatpush3.msra.mxu1 %v386_v8  ;;  %v378_v20 = vld [vmem:[#allocation8 + $0x30] sm:$0xff]  ;;  %v377_v21 = vld [vmem:[#allocation8 + $0x28] sm:$0xff]  ;;  %v376_v22 = vld [vmem:[#allocation8 + $0x20] sm:$0xff] }
  0x2e   :  { %675 = vmatprep.subr.mxu1 %v385_v9  ;;  %v746_v23 = vld [vmem:[#allocation3 + $0x18] sm:$0xff]   ;;  %v747_v25 = vld [vmem:[#allocation3 + $0x20] sm:$0xff]   ;;  %v748_v26 = vld [vmem:[#allocation3 + $0x28] sm:$0xff]  }
  0x2f   :  { %676 = vmatpush3.msra.mxu1 %v385_v9  ;;  %v375_v24 = vld [vmem:[#allocation8 + $0x18] sm:$0xff]  ;;  %v749_v27 = vld [vmem:[#allocation3 + $0x30] sm:$0xff]   ;;  %v373_v30 = vld [vmem:[#allocation8 + $0x8] sm:$0xff] }
  0x30   :  { %644 = vmatpush3.bf16.msra.mxu0 %v737_v2  ;;  %677 = vmatprep.subr.mxu1 %v384_v11  ;;  %v750_v28 = vld [vmem:[#allocation3 + $0x38] sm:$0xff]   ;;  %v374_v29 = vld [vmem:[#allocation8 + $0x10] sm:$0xff]  ;;  %v372_v31 = vld [vmem:[#allocation8] sm:$0xff] }
  0x31   :  { %645 = vmatprep.subr.bf16.mxu0 %v738_v3  ;;  %678 = vmatpush3.msra.mxu1 %v384_v11  ;;  %v590_v48 = vld [vmem:[%s894_s3] ss:$0 sm:$0xff]  ;;  %s844_s3 = smov [#allocation9]  }
  0x32   :  { %679 = vmatprep.subr.mxu1 %v383_v12  ;;  %s561_s7 = sshll.u32 %s844_s3, 4  ;;  %s562_s7 = int_to_ptr.vmem [resolvable:$true] %s561_s7 }
  0x33   :  { %680 = vmatpush3.msra.mxu1 %v383_v12  ;;  %s811_s8 = scalar_lea.vmem %s562_s7, 2048  ;;  %p816_p2 = scmp.lt.s32.totalorder %s562_s7, %s562_s7 }
  0x34   :  { %646 = vmatpush3.bf16.msra.mxu0 %v738_v3  ;;  %681 = vmatprep.subr.mxu1 %v382_v14  ;;  %p812_p1 = scmp.ne.s32.totalorder %s562_s7, %s811_s8  ;;  %p817_p3 = scmp.lt.s32.totalorder %s811_s8, %s811_s8 }
  0x35   :  { %647 = vmatprep.subr.bf16.mxu0 %v739_v5  ;;  %682 = vmatpush3.msra.mxu1 %v382_v14 }
  0x36   :  { %683 = vmatprep.subr.mxu1 %v381_v15  ;;  %p818_p4 = por %p817_p3, %p816_p2 }
  0x37   :  { %684 = vmatpush3.msra.mxu1 %v381_v15 }
  0x38   :  { %648 = vmatpush3.bf16.msra.mxu0 %v739_v5  ;;  %685 = vmatprep.subr.mxu1 %v380_v16  ;;  %p819_p5 = pnand %p818_p4, %p812_p1 }
  0x39   :  { %649 = vmatprep.subr.bf16.mxu0 %v740_v6  ;;  %686 = vmatpush3.msra.mxu1 %v380_v16 }
  0x3a   :  { %687 = vmatprep.subr.mxu1 %v379_v18 }
  0x3b   :  { %688 = vmatpush3.msra.mxu1 %v379_v18 }
  0x3c   :  { %650 = vmatpush3.bf16.msra.mxu0 %v740_v6  ;;  %689 = vmatprep.subr.mxu1 %v378_v20 }
  0x3d   :  { %651 = vmatprep.subr.bf16.mxu0 %v741_v10  ;;  %690 = vmatpush3.msra.mxu1 %v378_v20 }
  0x3e   :  { %691 = vmatprep.subr.mxu1 %v377_v21 }
  0x3f   :  { %692 = vmatpush3.msra.mxu1 %v377_v21 }
  0x40   :  { %652 = vmatpush3.bf16.msra.mxu0 %v741_v10  ;;  %693 = vmatprep.subr.mxu1 %v376_v22 }
  0x41   :  { %653 = vmatprep.subr.bf16.mxu0 %v742_v13  ;;  %694 = vmatpush3.msra.mxu1 %v376_v22 }
  0x42   :  { %695 = vmatprep.subr.mxu1 %v375_v24 }
  0x43   :  { %696 = vmatpush3.msra.mxu1 %v375_v24 }
  0x44   :  { %654 = vmatpush3.bf16.msra.mxu0 %v742_v13  ;;  %697 = vmatprep.subr.mxu1 %v374_v29 }
  0x45   :  { %698 = vmatpush3.msra.mxu1 %v374_v29 }
  0x46   :  { %699 = vmatprep.subr.mxu1 %v373_v30 }
  0x47   :  { %656 = vmatmul.mubr.bf16.vlgmr.msra.gmra.mxu0 %v744_v17  ;;  %700 = vmatpush3.msra.mxu1 %v373_v30 }
  0x48   :  { %659 = vmatprep.mubr.bf16.mxu0 %v745_v19  ;;  %701 = vmatprep.subr.mxu1 %v372_v31 }
  0x49   :  { %702 = vmatpush3.msra.mxu1 %v372_v31 }
  0x4f   :  { %660 = vmatmul.mubr.bf16.gmra.mxu0 %v746_v23 }
  0x50   :  { %663 = vmatprep.mubr.bf16.mxu0 %v747_v25 }
  0x57   :  { %664 = vmatmul.mubr.bf16.gmra.mxu0 %v748_v26 }
  0x58   :  { %667 = vmatprep.mubr.bf16.mxu0 %v749_v27 }
  0x5f   :  { %668 = vmatmul.mubr.bf16.gmra.mxu0 %v750_v28 }
 0x107   :  { %v657_v32 = vpop.f32.mrf.mxu0 }
 0x109   :  { %v258_v33 = vpop.f32.mrf.mxu0 }
 0x10a   :  { %703 = vmatprep.mubr.f32.mxu1 %v258_v33 }
 0x10b   :  { %v658_v34 = vpop.f32.mrf.mxu0 }
 0x10d   :  { %v261_v35 = vpop.f32.mrf.mxu0 }
 0x10e   :  { %704 = vmatmul.mubr.f32.vlgmr.msra.gmra.mxu1 %v261_v35 }
 0x10f   :  { %v661_v36 = vpop.f32.mrf.mxu0  ;;  %706 = vmatprep.mubr.f32.mxu1 %v657_v32 }
 0x111   :  { %v274_v37 = vpop.f32.mrf.mxu0 }
 0x112   :  { %707 = vmatmul.mubr.f32.gmra.mxu1 %v658_v34 }
 0x113   :  { %v662_v38 = vpop.f32.mrf.mxu0  ;;  %709 = vmatprep.mubr.f32.mxu1 %v274_v37 }
 0x115   :  { %v277_v39 = vpop.f32.mrf.mxu0 }
 0x116   :  { %710 = vmatmul.mubr.f32.gmra.mxu1 %v277_v39 }
 0x117   :  { %v665_v40 = vpop.f32.mrf.mxu0  ;;  %712 = vmatprep.mubr.f32.mxu1 %v661_v36 }
 0x119   :  { %v290_v41 = vpop.f32.mrf.mxu0 }
 0x11a   :  { %713 = vmatmul.mubr.f32.gmra.mxu1 %v662_v38 }
 0x11b   :  { %v666_v42 = vpop.f32.mrf.mxu0  ;;  %715 = vmatprep.mubr.f32.mxu1 %v290_v41 }
 0x11d   :  { %v293_v43 = vpop.f32.mrf.mxu0 }
 0x11e   :  { %716 = vmatmul.mubr.f32.gmra.mxu1 %v293_v43 }
 0x11f   :  { %v669_v44 = vpop.f32.mrf.mxu0  ;;  %718 = vmatprep.mubr.f32.mxu1 %v665_v40 }
 0x121   :  { %v306_v45 = vpop.f32.mrf.mxu0 }
 0x122   :  { %719 = vmatmul.mubr.f32.gmra.mxu1 %v666_v42 }
 0x123   :  { %v670_v46 = vpop.f32.mrf.mxu0  ;;  %721 = vmatprep.mubr.f32.mxu1 %v306_v45 }
 0x125   :  { %v309_v47 = vpop.f32.mrf.mxu0 }
 0x126   :  { %722 = vmatmul.mubr.f32.gmra.mxu1 %v309_v47 }
 0x127   :  { %724 = vmatprep.mubr.f32.mxu1 %v669_v44 }
 0x12a   :  { %725 = vmatmul.mubr.f32.gmra.mxu1 %v670_v46 }
 0x1ce   :  { %v705_v49 = vpop.f32.mrf.mxu1 }
 0x1cf   :  { %v467_v50 = vadd.f32 %v705_v49, %v590_v48 }
 0x1d0   :  { %v461_v51 = vpop.f32.mrf.mxu1 }
 0x1d1   :  { %541 = vst [vmem:[#allocation9 + $0x8] sm:$0xff] %v467_v50  ;;  %v462_v52 = vadd.f32 %v590_v48, %v461_v51 }
 0x1d2   :  { %v708_v53 = vpop.f32.mrf.mxu1 }
 0x1d3   :  { %540 = vst [vmem:[#allocation9] sm:$0xff] %v462_v52  ;;  %v477_v54 = vadd.f32 %v708_v53, %v590_v48 }
 0x1d4   :  { %v471_v55 = vpop.f32.mrf.mxu1 }
 0x1d5   :  { %543 = vst [vmem:[#allocation9 + $0x18] sm:$0xff] %v477_v54  ;;  %v472_v56 = vadd.f32 %v590_v48, %v471_v55 }
 0x1d6   :  { %v711_v57 = vpop.f32.mrf.mxu1 }
 0x1d7   :  { %542 = vst [vmem:[#allocation9 + $0x10] sm:$0xff] %v472_v56  ;;  %v487_v58 = vadd.f32 %v711_v57, %v590_v48 }
 0x1d8   :  { %v481_v59 = vpop.f32.mrf.mxu1 }
 0x1d9   :  { %545 = vst [vmem:[#allocation9 + $0x28] sm:$0xff] %v487_v58  ;;  %v482_v60 = vadd.f32 %v590_v48, %v481_v59 }
 0x1da   :  { %v714_v61 = vpop.f32.mrf.mxu1 }
 0x1db   :  { %544 = vst [vmem:[#allocation9 + $0x20] sm:$0xff] %v482_v60  ;;  %v497_v62 = vadd.f32 %v714_v61, %v590_v48 }
 0x1dc   :  { %v491_v63 = vpop.f32.mrf.mxu1 }
 0x1dd   :  { %547 = vst [vmem:[#allocation9 + $0x38] sm:$0xff] %v497_v62  ;;  %v492_v0 = vadd.f32 %v590_v48, %v491_v63 }
 0x1de   :  { %v717_v1 = vpop.f32.mrf.mxu1 }
 0x1df   :  { %546 = vst [vmem:[#allocation9 + $0x30] sm:$0xff] %v492_v0  ;;  %v507_v2 = vadd.f32 %v717_v1, %v590_v48 }
 0x1e0   :  { %v501_v3 = vpop.f32.mrf.mxu1 }
 0x1e1   :  { %549 = vst [vmem:[#allocation9 + $0x48] sm:$0xff] %v507_v2  ;;  %v502_v4 = vadd.f32 %v590_v48, %v501_v3 }
 0x1e2   :  { %v720_v5 = vpop.f32.mrf.mxu1 }
 0x1e3   :  { %548 = vst [vmem:[#allocation9 + $0x40] sm:$0xff] %v502_v4  ;;  %v517_v6 = vadd.f32 %v720_v5, %v590_v48 }
 0x1e4   :  { %v511_v7 = vpop.f32.mrf.mxu1 }
 0x1e5   :  { %551 = vst [vmem:[#allocation9 + $0x58] sm:$0xff] %v517_v6  ;;  %v512_v8 = vadd.f32 %v590_v48, %v511_v7 }
 0x1e6   :  { %v723_v9 = vpop.f32.mrf.mxu1 }
 0x1e7   :  { %550 = vst [vmem:[#allocation9 + $0x50] sm:$0xff] %v512_v8  ;;  %v527_v10 = vadd.f32 %v723_v9, %v590_v48 }
 0x1e8   :  { %v521_v11 = vpop.f32.mrf.mxu1 }
 0x1e9   :  { %553 = vst [vmem:[#allocation9 + $0x68] sm:$0xff] %v527_v10  ;;  %v522_v12 = vadd.f32 %v590_v48, %v521_v11 }
 0x1ea   :  { %v726_v13 = vpop.f32.mrf.mxu1 }
 0x1eb   :  { %552 = vst [vmem:[#allocation9 + $0x60] sm:$0xff] %v522_v12  ;;  %v537_v14 = vadd.f32 %v726_v13, %v590_v48 }
 0x1ec   :  { %v531_v15 = vpop.f32.mrf.mxu1 }
 0x1ed   :  { %555 = vst [vmem:[#allocation9 + $0x78] sm:$0xff] %v537_v14  ;;  %v532_v16 = vadd.f32 %v590_v48, %v531_v15 }
 0x1ef   :  { %554 = vst [vmem:[#allocation9 + $0x70] sm:$0xff] %v532_v16 }
 0x1f0   :  { %822 = shalt.err (!%p819_p5)
}
 0x1f1   :  { %567 = dma.vmem_to_hbm [thread:$0]  %s562_s7, 2048, %s895_s4, [#allocation5], %s842_s1, %s842_s1, %s843_s30  }
 0x1f2   :  { %835 = dma.done.wait [#allocation5], 2048  }
 0x1f3   :  { %836 = vsyncadd [#allocation5], 4294965248 }
 0x1f4   :  { %571 = vsyncpa [#allocation4], 1 }
 0x1f5   :  { %572 = vsyncpa [#allocation7], 1 }
 0x1f6   :  { %573 = vsyncpa [#allocation5], 1 }

</bundles_post_ra>
